<compile_context>
chip_gen: v5e
topology: v5e:2x2
jax: 0.10.0
libtpu: 0.0.40
codegen_flags: <defaults>
</compile_context>

<pallas_src>
import jax
import jax.numpy as jnp
from jax.experimental import pallas as pl
from jax.experimental.pallas import tpu as pltpu


def _round_up(x, m):
    return ((x + m - 1) // m) * m


def _vmem_cap_bytes():
    phys = 64 * 2**20  # conservative fallback (v7x per-TC size)
    try:
        info = pltpu.get_tpu_info()
        phys = int(getattr(info, "vmem_capacity_bytes", phys))
    except Exception:
        pass
    return int(phys * 0.75)


def _make_kernel(b_tile, t_tile, compute_dtype):
    m_rows = b_tile * t_tile

    def kernel(tok_ref, tw1_ref, b1_ref, w2_ref, b2_ref, out_ref, acc_ref):
        ti = pl.program_id(1)

        @pl.when(ti == 0)
        def _init():
            # ReLU output is >= 0 and padded time tokens hit the sentinel row (relu==0),
            # so 0 is a correct identity for the running max of this module.
            acc_ref[...] = jnp.zeros_like(acc_ref)

        v_pad = tw1_ref.shape[0]
        tok = tok_ref[...]                                         # (M, 1) int32
        # One-hot row gather on the MXU against the VMEM-resident FOLDED table TW1.
        # TODO(synk): replace with a direct row gather for large vocabularies.
        onehot = (tok == jax.lax.broadcasted_iota(jnp.int32, (m_rows, v_pad), 1)
                  ).astype(compute_dtype)
        # Single matmul per step: (M, Vp) @ (Vp, Hp) == gathered rows of table@W1.
        h = jnp.dot(onehot, tw1_ref[...], preferred_element_type=jnp.float32)
        h = jnp.maximum(h + b1_ref[...], 0.0)                      # bias + ReLU in f32
        h = h.reshape(b_tile, t_tile, -1)                          # (B_TILE, T_TILE, Hp)
        # Online max over time, folded into the per-batch-tile VMEM accumulator.
        acc_ref[...] = jnp.maximum(acc_ref[...], jnp.max(h, axis=1))

        @pl.when(ti == pl.num_programs(1) - 1)
        def _finalize():
            out = jnp.dot(acc_ref[...], w2_ref[...],
                          preferred_element_type=jnp.float32) + b2_ref[...]
            out_ref[...] = out.astype(out_ref.dtype)

    return kernel


def rnn_forward(tokens, emb_table, w1, b1, w2, b2, *,
                compute_dtype=jnp.bfloat16, b_tile=None, t_tile=None):
    """tokens: (B, T) int32; returns (B, num_classes) float32."""
    B, T = tokens.shape
    V, E = emb_table.shape
    H = w1.shape[1]
    C = w2.shape[1]
    cd = jnp.dtype(compute_dtype)

    # Lane-dense padding (multiples of 128); reserve one extra vocab row as the
    # padded-time sentinel.
    Vp = _round_up(V + 1, 128)
    Hp = _round_up(H, 128)
    Cp = _round_up(C, 128)
    sentinel = Vp - 1

    # Tile sizes (multiples of 8 sublanes). B tiles ride the "parallel" axis; keep >= 2
    # batch tiles when possible so both v7x TensorCores get work.
    if b_tile is None:
        b_tile = _round_up(min(B, 64), 8)
        if B > 8:
            b_tile = min(b_tile, _round_up(-(-B // 2), 8))
    b_tile = _round_up(b_tile, 8)
    if t_tile is None:
        t_tile = min(_round_up(T, 8), 128)
    t_tile = _round_up(t_tile, 8)

    # Generation-aware VMEM budget that also counts live in-kernel temporaries.
    cap = _vmem_cap_bytes()

    def _estimate(bt, tt):
        m = bt * tt
        resident = Vp * Hp * cd.itemsize + (Hp + Hp * Cp + Cp) * 4   # single-buffered
        streamed = 2 * (m * 512 + bt * Cp * 4)                       # tok + out, 2 bufs
        temps = m * Vp * (cd.itemsize + 4) + 2 * m * Hp * 4          # onehot + h values
        return resident + streamed + temps + bt * Hp * 4             # + acc scratch

    while _estimate(b_tile, t_tile) > cap and t_tile > 8:
        t_tile = max(8, _round_up(t_tile // 2, 8))
    vmem_limit = int(min(cap, max(32 * 2**20, int(1.5 * _estimate(b_tile, t_tile)))))

    Bp = _round_up(B, b_tile)
    Tp = _round_up(T, t_tile)
    nb, nt = Bp // b_tile, Tp // t_tile
    M = b_tile * t_tile

    # Fold linear1 into the embedding table (exact, done once in f32 outside the kernel).
    # Padded H lanes are zero; the sentinel row is very negative so relu(row + b1) == 0.
    tw1 = jnp.dot(emb_table.astype(jnp.float32), w1.astype(jnp.float32))
    tw1_p = jnp.pad(tw1, ((0, Vp - V), (0, Hp - H)))
    tw1_p = tw1_p.at[sentinel, :].set(-1e9).astype(cd)
    b1_p = jnp.pad(b1, ((0, 0), (0, Hp - H))).astype(jnp.float32)
    w2_p = jnp.pad(w2, ((0, Hp - H), (0, Cp - C))).astype(jnp.float32)
    b2_p = jnp.pad(b2, ((0, 0), (0, Cp - C))).astype(jnp.float32)

    # Padded time/batch positions map to the sentinel row (relu == 0 -> no-op for max);
    # padded batch rows are sliced off.  Pre-flatten each (b_tile, t_tile) tile into a
    # sublane-major (M, 1) column so the kernel needs no int relayouts.
    tok_p = jnp.pad(tokens.astype(jnp.int32), ((0, Bp - B), (0, Tp - T)),
                    constant_values=sentinel)
    tok4 = (tok_p.reshape(nb, b_tile, nt, t_tile)
                 .transpose(0, 2, 1, 3)
                 .reshape(nb, nt, M, 1))

    kernel = _make_kernel(b_tile, t_tile, cd)

    def _call(single_buffer_params):
        pkw = {"pipeline_mode": pl.Buffered(1)} if single_buffer_params else {}
        grid_spec = pltpu.PrefetchScalarGridSpec(
            num_scalar_prefetch=0,
            grid=(nb, nt),
            in_specs=[
                # Per-step token tile, pre-flattened to (M, 1).
                pl.BlockSpec((None, None, M, 1), lambda bi, ti: (bi, ti, 0, 0)),
                # Constant-index parameters: DMA'd once, kept resident; single-buffered.
                pl.BlockSpec((Vp, Hp), lambda bi, ti: (0, 0), **pkw),  # folded table@W1
                pl.BlockSpec((1, Hp), lambda bi, ti: (0, 0), **pkw),   # b1
                pl.BlockSpec((Hp, Cp), lambda bi, ti: (0, 0), **pkw),  # w2
                pl.BlockSpec((1, Cp), lambda bi, ti: (0, 0), **pkw),   # b2
            ],
            out_specs=pl.BlockSpec((b_tile, Cp), lambda bi, ti: (bi, 0)),
            scratch_shapes=[pltpu.VMEM((b_tile, Hp), jnp.float32)],
        )
        return pl.pallas_call(
            kernel,
            out_shape=jax.ShapeDtypeStruct((Bp, Cp), jnp.float32),
            grid_spec=grid_spec,
            compiler_params=pltpu.CompilerParams(
                dimension_semantics=("parallel", "arbitrary"),
                vmem_limit_bytes=vmem_limit,
            ),
        )(tok4, tw1_p, b1_p, w2_p, b2_p)

    try:
        out_p = _call(single_buffer_params=True)
    except Exception:
        # Fallback if pipeline_mode=pl.Buffered(1) is unsupported by this toolchain.
        out_p = _call(single_buffer_params=False)

    return out_p[:B, :C]


def init_params(key, vocab_size, emb_dim, hidden_dim, num_classes, pad_idx):
    k_emb, k_w1, k_b1, k_w2, k_b2 = jax.random.split(key, 5)

    # nn.Embedding: N(0, 1), padding_idx row zeroed.
    emb_table = jax.random.normal(k_emb, (vocab_size, emb_dim), dtype=jnp.float32)
    emb_table = emb_table.at[pad_idx].set(0.0)

    # nn.Linear: U(-1/sqrt(fan_in), 1/sqrt(fan_in)); stored as (in, out).
    lim1 = 1.0 / (emb_dim ** 0.5)
    w1 = jax.random.uniform(k_w1, (emb_dim, hidden_dim), jnp.float32, -lim1, lim1)
    b1 = jax.random.uniform(k_b1, (1, hidden_dim), jnp.float32, -lim1, lim1)

    lim2 = 1.0 / (hidden_dim ** 0.5)
    w2 = jax.random.uniform(k_w2, (hidden_dim, num_classes), jnp.float32, -lim2, lim2)
    b2 = jax.random.uniform(k_b2, (1, num_classes), jnp.float32, -lim2, lim2)

    return emb_table, w1, b1, w2, b2


if __name__ == "__main__":
    vocab_size, emb_dim, hidden_dim, num_classes, pad_idx = 50, 16, 32, 4, 0
    batch, seq_len = 2, 14

    key = jax.random.PRNGKey(0)
    k_params, k_tok = jax.random.split(key)

    emb_table, w1, b1, w2, b2 = init_params(
        k_params, vocab_size, emb_dim, hidden_dim, num_classes, pad_idx)

    tokens = jax.random.randint(k_tok, (batch, seq_len), 0, vocab_size, dtype=jnp.int32)
    tokens = tokens.at[:, -2:].set(pad_idx)   # exercise the zeroed pad-embedding row

    # Reference in plain JAX.
    ref_emb = jnp.take(emb_table, tokens, axis=0)
    ref_h = jnp.maximum(jnp.einsum("bte,eh->bth", ref_emb, w1) + b1[None, :, :], 0.0)
    ref_out = jnp.max(ref_h, axis=1) @ w2 + b2

    # Default bf16-streamed folded table (f32 accumulation / bias / ReLU / max).
    # t_tile=8 forces a 2-step time reduction whose padded last tile hits the sentinel.
    out = rnn_forward(tokens, emb_table, w1, b1, w2, b2, t_tile=8)
    jax.block_until_ready(out)
    assert out.shape == (batch, num_classes)
    assert jnp.allclose(out, ref_out, atol=5e-2, rtol=5e-2), \
        f"max err {jnp.max(jnp.abs(out - ref_out))}"

    # Full-f32 path (single time tile, padded tail positions via sentinel row).
    out_f32 = rnn_forward(tokens, emb_table, w1, b1, w2, b2,
                          compute_dtype=jnp.float32)
    jax.block_until_ready(out_f32)
    assert jnp.allclose(out_f32, ref_out, atol=1e-4, rtol=1e-4), \
        f"max err {jnp.max(jnp.abs(out_f32 - ref_out))}"

    print("KERNEL_OK")
</pallas_src>

<mosaic_0001>
module attributes {stable_mosaic.version = 11 : i64} {
  func.func @kernel(%arg0: i32, %arg1: i32, %arg2: memref<1x1x64x1xi32, #tpu.memory_space<vmem>>, %arg3: memref<128x128xbf16, #tpu.memory_space<vmem>>, %arg4: memref<1x128xf32, #tpu.memory_space<vmem>>, %arg5: memref<128x128xf32, #tpu.memory_space<vmem>>, %arg6: memref<1x128xf32, #tpu.memory_space<vmem>>, %arg7: memref<8x128xf32, #tpu.memory_space<vmem>>, %arg8: memref<8x128xf32, #tpu.memory_space<vmem>>) attributes {dimension_semantics = [#tpu.dimension_semantics<parallel>, #tpu.dimension_semantics<arbitrary>], iteration_bounds = array<i64: 1, 2>, scalar_prefetch = 0 : i64, scratch_operands = 1 : i64, tpu.core_type = #tpu.core_type<tc>, window_params = [{transform_indices = @transform_0, window_bounds = array<i64: 1, 1, 64, 1>}, {pipeline_mode = #tpu.pipeline_mode<synchronous>, transform_indices = @transform_1, window_bounds = array<i64: 128, 128>}, {pipeline_mode = #tpu.pipeline_mode<synchronous>, transform_indices = @transform_2, window_bounds = array<i64: 1, 128>}, {pipeline_mode = #tpu.pipeline_mode<synchronous>, transform_indices = @transform_3, window_bounds = array<i64: 128, 128>}, {pipeline_mode = #tpu.pipeline_mode<synchronous>, transform_indices = @transform_4, window_bounds = array<i64: 1, 128>}, {transform_indices = @transform_5, window_bounds = array<i64: 8, 128>}]} {
    %c0_i32 = arith.constant 0 : i32
    %0 = arith.cmpi eq, %arg1, %c0_i32 : i32
    %1 = arith.extui %0 : i1 to i32
    %c0_i32_0 = arith.constant 0 : i32
    %2 = arith.cmpi ne, %1, %c0_i32_0 : i32
    scf.if %2 {
      %cst_15 = arith.constant 0.000000e+00 : f32
      %26 = vector.broadcast %cst_15 : f32 to vector<8x128xf32>
      %c0_16 = arith.constant 0 : index
      %c0_17 = arith.constant 0 : index
      %27 = vector.load %arg8[%c0_16, %c0_17] : memref<8x128xf32, #tpu.memory_space<vmem>>, vector<8x128xf32>
      tpu.vector_store %arg8[%c0_16, %c0_17], %26 {strides = array<i32>} : memref<8x128xf32, #tpu.memory_space<vmem>>, vector<8x128xf32>,
    } else {
    }
    %c0 = arith.constant 0 : index
    %c0_1 = arith.constant 0 : index
    %c0_2 = arith.constant 0 : index
    %c0_3 = arith.constant 0 : index
    %3 = vector.load %arg2[%c0, %c0_1, %c0_2, %c0_3] : memref<1x1x64x1xi32, #tpu.memory_space<vmem>>, vector<1x1x64x1xi32>
    %4 = vector.shape_cast %3 : vector<1x1x64x1xi32> to vector<64x1xi32>
    %5 = tpu.iota {dimensions = array<i32: 1>} : vector<64x128xi32>
    %6 = vector.broadcast %4 : vector<64x1xi32> to vector<64x128xi32>
    %7 = arith.cmpi eq, %6, %5 : vector<64x128xi32>
    %8 = arith.extui %7 : vector<64x128xi1> to vector<64x128xi32>
    %9 = arith.sitofp %8 : vector<64x128xi32> to vector<64x128xf32>
    %10 = arith.truncf %9 : vector<64x128xf32> to vector<64x128xbf16>
    %c0_4 = arith.constant 0 : index
    %c0_5 = arith.constant 0 : index
    %11 = vector.load %arg3[%c0_4, %c0_5] : memref<128x128xbf16, #tpu.memory_space<vmem>>, vector<128x128xbf16>
    %cst = arith.constant dense<0.000000e+00> : vector<64x128xf32>
    %12 = tpu.matmul %10, %11, %cst {dimension_numbers = #tpu.dot_dimension_numbers<[1], [0], [0], [1], [0, 0, 1, 1], [], []>} : vector<64x128xbf16>, vector<128x128xbf16>, vector<64x128xf32> -> vector<64x128xf32>
    %c0_6 = arith.constant 0 : index
    %c0_7 = arith.constant 0 : index
    %13 = vector.load %arg4[%c0_6, %c0_7] : memref<1x128xf32, #tpu.memory_space<vmem>>, vector<1x128xf32>
    %14 = vector.broadcast %13 : vector<1x128xf32> to vector<64x128xf32>
    %15 = arith.addf %12, %14 : vector<64x128xf32>
    %cst_8 = arith.constant 0.000000e+00 : f32
    %16 = vector.broadcast %cst_8 : f32 to vector<64x128xf32>
    %17 = arith.maximumf %15, %16 : vector<64x128xf32>
    %18 = vector.shape_cast %17 : vector<64x128xf32> to vector<8x8x128xf32>
    %c0_9 = arith.constant 0 : index
    %c0_10 = arith.constant 0 : index
    %19 = vector.load %arg8[%c0_9, %c0_10] : memref<8x128xf32, #tpu.memory_space<vmem>>, vector<8x128xf32>
    %cst_11 = arith.constant dense<0xFF800000> : vector<8x128xf32>
    %20 = vector.multi_reduction <maximumf>, %18, %cst_11 [1] : vector<8x8x128xf32> to vector<8x128xf32>
    %21 = arith.maximumf %19, %20 : vector<8x128xf32>
    %c0_12 = arith.constant 0 : index
    %c0_13 = arith.constant 0 : index
    %22 = vector.load %arg8[%c0_12, %c0_13] : memref<8x128xf32, #tpu.memory_space<vmem>>, vector<8x128xf32>
    tpu.vector_store %arg8[%c0_12, %c0_13], %21 {strides = array<i32>} : memref<8x128xf32, #tpu.memory_space<vmem>>, vector<8x128xf32>,
    %c1_i32 = arith.constant 1 : i32
    %23 = arith.cmpi eq, %arg1, %c1_i32 : i32
    %24 = arith.extui %23 : i1 to i32
    %c0_i32_14 = arith.constant 0 : i32
    %25 = arith.cmpi ne, %24, %c0_i32_14 : i32
    scf.if %25 {
      %c0_15 = arith.constant 0 : index
      %c0_16 = arith.constant 0 : index
      %26 = vector.load %arg8[%c0_15, %c0_16] : memref<8x128xf32, #tpu.memory_space<vmem>>, vector<8x128xf32>
      %c0_17 = arith.constant 0 : index
      %c0_18 = arith.constant 0 : index
      %27 = vector.load %arg5[%c0_17, %c0_18] : memref<128x128xf32, #tpu.memory_space<vmem>>, vector<128x128xf32>
      %cst_19 = arith.constant dense<0.000000e+00> : vector<8x128xf32>
      %28 = tpu.matmul %26, %27, %cst_19 {dimension_numbers = #tpu.dot_dimension_numbers<[1], [0], [0], [1], [0, 0, 1, 1], [], []>} : vector<8x128xf32>, vector<128x128xf32>, vector<8x128xf32> -> vector<8x128xf32>
      %c0_20 = arith.constant 0 : index
      %c0_21 = arith.constant 0 : index
      %29 = vector.load %arg6[%c0_20, %c0_21] : memref<1x128xf32, #tpu.memory_space<vmem>>, vector<1x128xf32>
      %30 = vector.broadcast %29 : vector<1x128xf32> to vector<8x128xf32>
      %31 = arith.addf %28, %30 : vector<8x128xf32>
      %c0_22 = arith.constant 0 : index
      %c0_23 = arith.constant 0 : index
      %32 = vector.load %arg7[%c0_22, %c0_23] : memref<8x128xf32, #tpu.memory_space<vmem>>, vector<8x128xf32>
      tpu.vector_store %arg7[%c0_22, %c0_23], %31 {strides = array<i32>} : memref<8x128xf32, #tpu.memory_space<vmem>>, vector<8x128xf32>,
    } else {
    }
    return
  }
  func.func @transform_0(%arg0: i32, %arg1: i32) -> (i32, i32, i32, i32) {
    %c0_i32 = arith.constant 0 : i32
    %c0_i32_0 = arith.constant 0 : i32
    %c0_i32_1 = arith.constant 0 : i32
    return %arg0, %arg1, %c0_i32, %c0_i32_0 : i32, i32, i32, i32
  }
  func.func @transform_1(%arg0: i32, %arg1: i32) -> (i32, i32) {
    %c0_i32 = arith.constant 0 : i32
    %c0_i32_0 = arith.constant 0 : i32
    %c0_i32_1 = arith.constant 0 : i32
    return %c0_i32, %c0_i32_0 : i32, i32
  }
  func.func @transform_2(%arg0: i32, %arg1: i32) -> (i32, i32) {
    %c0_i32 = arith.constant 0 : i32
    %c0_i32_0 = arith.constant 0 : i32
    %c0_i32_1 = arith.constant 0 : i32
    return %c0_i32, %c0_i32_0 : i32, i32
  }
  func.func @transform_3(%arg0: i32, %arg1: i32) -> (i32, i32) {
    %c0_i32 = arith.constant 0 : i32
    %c0_i32_0 = arith.constant 0 : i32
    %c0_i32_1 = arith.constant 0 : i32
    return %c0_i32, %c0_i32_0 : i32, i32
  }
  func.func @transform_4(%arg0: i32, %arg1: i32) -> (i32, i32) {
    %c0_i32 = arith.constant 0 : i32
    %c0_i32_0 = arith.constant 0 : i32
    %c0_i32_1 = arith.constant 0 : i32
    return %c0_i32, %c0_i32_0 : i32, i32
  }
  func.func @transform_5(%arg0: i32, %arg1: i32) -> (i32, i32) {
    %c0_i32 = arith.constant 0 : i32
    %c0_i32_0 = arith.constant 0 : i32
    return %arg0, %c0_i32 : i32, i32
  }
}

module attributes {stable_mosaic.version = 11 : i64} {
  func.func @kernel(%arg0: i32, %arg1: i32, %arg2: memref<1x1x64x1xi32, #tpu.memory_space<vmem>>, %arg3: memref<128x128xbf16, #tpu.memory_space<vmem>>, %arg4: memref<1x128xf32, #tpu.memory_space<vmem>>, %arg5: memref<128x128xf32, #tpu.memory_space<vmem>>, %arg6: memref<1x128xf32, #tpu.memory_space<vmem>>, %arg7: memref<8x128xf32, #tpu.memory_space<vmem>>, %arg8: memref<8x128xf32, #tpu.memory_space<vmem>>) attributes {dimension_semantics = [#tpu.dimension_semantics<parallel>, #tpu.dimension_semantics<arbitrary>], iteration_bounds = array<i64: 1, 2>, scalar_prefetch = 0 : i64, scratch_operands = 1 : i64, tpu.core_type = #tpu.core_type<tc>, window_params = [{transform_indices = @transform_0, window_bounds = array<i64: 1, 1, 64, 1>}, {pipeline_mode = #tpu.pipeline_mode<synchronous>, transform_indices = @transform_1, window_bounds = array<i64: 128, 128>}, {pipeline_mode = #tpu.pipeline_mode<synchronous>, transform_indices = @transform_2, window_bounds = array<i64: 1, 128>}, {pipeline_mode = #tpu.pipeline_mode<synchronous>, transform_indices = @transform_3, window_bounds = array<i64: 128, 128>}, {pipeline_mode = #tpu.pipeline_mode<synchronous>, transform_indices = @transform_4, window_bounds = array<i64: 1, 128>}, {transform_indices = @transform_5, window_bounds = array<i64: 8, 128>}]} {
    %c0_i32 = arith.constant 0 : i32
    %0 = arith.cmpi eq, %arg1, %c0_i32 : i32
    %1 = arith.extui %0 : i1 to i32
    %c0_i32_0 = arith.constant 0 : i32
    %2 = arith.cmpi ne, %1, %c0_i32_0 : i32
    scf.if %2 {
      %cst_15 = arith.constant 0.000000e+00 : f32
      %26 = vector.broadcast %cst_15 : f32 to vector<8x128xf32>
      %c0_16 = arith.constant 0 : index
      %c0_17 = arith.constant 0 : index
      %27 = vector.load %arg8[%c0_16, %c0_17] : memref<8x128xf32, #tpu.memory_space<vmem>>, vector<8x128xf32>
      tpu.vector_store %arg8[%c0_16, %c0_17], %26 {strides = array<i32>} : memref<8x128xf32, #tpu.memory_space<vmem>>, vector<8x128xf32>,
    } else {
    }
    %c0 = arith.constant 0 : index
    %c0_1 = arith.constant 0 : index
    %c0_2 = arith.constant 0 : index
    %c0_3 = arith.constant 0 : index
    %3 = vector.load %arg2[%c0, %c0_1, %c0_2, %c0_3] : memref<1x1x64x1xi32, #tpu.memory_space<vmem>>, vector<1x1x64x1xi32>
    %4 = vector.shape_cast %3 : vector<1x1x64x1xi32> to vector<64x1xi32>
    %5 = tpu.iota {dimensions = array<i32: 1>} : vector<64x128xi32>
    %6 = vector.broadcast %4 : vector<64x1xi32> to vector<64x128xi32>
    %7 = arith.cmpi eq, %6, %5 : vector<64x128xi32>
    %8 = arith.extui %7 : vector<64x128xi1> to vector<64x128xi32>
    %9 = arith.sitofp %8 : vector<64x128xi32> to vector<64x128xf32>
    %10 = arith.truncf %9 : vector<64x128xf32> to vector<64x128xbf16>
    %c0_4 = arith.constant 0 : index
    %c0_5 = arith.constant 0 : index
    %11 = vector.load %arg3[%c0_4, %c0_5] : memref<128x128xbf16, #tpu.memory_space<vmem>>, vector<128x128xbf16>
    %cst = arith.constant dense<0.000000e+00> : vector<64x128xf32>
    %12 = tpu.matmul %10, %11, %cst {dimension_numbers = #tpu.dot_dimension_numbers<[1], [0], [0], [1], [0, 0, 1, 1], [], []>} : vector<64x128xbf16>, vector<128x128xbf16>, vector<64x128xf32> -> vector<64x128xf32>
    %c0_6 = arith.constant 0 : index
    %c0_7 = arith.constant 0 : index
    %13 = vector.load %arg4[%c0_6, %c0_7] : memref<1x128xf32, #tpu.memory_space<vmem>>, vector<1x128xf32>
    %14 = vector.broadcast %13 : vector<1x128xf32> to vector<64x128xf32>
    %15 = arith.addf %12, %14 : vector<64x128xf32>
    %cst_8 = arith.constant 0.000000e+00 : f32
    %16 = vector.broadcast %cst_8 : f32 to vector<64x128xf32>
    %17 = arith.maximumf %15, %16 : vector<64x128xf32>
    %18 = vector.shape_cast %17 : vector<64x128xf32> to vector<8x8x128xf32>
    %c0_9 = arith.constant 0 : index
    %c0_10 = arith.constant 0 : index
    %19 = vector.load %arg8[%c0_9, %c0_10] : memref<8x128xf32, #tpu.memory_space<vmem>>, vector<8x128xf32>
    %cst_11 = arith.constant dense<0xFF800000> : vector<8x128xf32>
    %20 = vector.multi_reduction <maximumf>, %18, %cst_11 [1] : vector<8x8x128xf32> to vector<8x128xf32>
    %21 = arith.maximumf %19, %20 : vector<8x128xf32>
    %c0_12 = arith.constant 0 : index
    %c0_13 = arith.constant 0 : index
    %22 = vector.load %arg8[%c0_12, %c0_13] : memref<8x128xf32, #tpu.memory_space<vmem>>, vector<8x128xf32>
    tpu.vector_store %arg8[%c0_12, %c0_13], %21 {strides = array<i32>} : memref<8x128xf32, #tpu.memory_space<vmem>>, vector<8x128xf32>,
    %c1_i32 = arith.constant 1 : i32
    %23 = arith.cmpi eq, %arg1, %c1_i32 : i32
    %24 = arith.extui %23 : i1 to i32
    %c0_i32_14 = arith.constant 0 : i32
    %25 = arith.cmpi ne, %24, %c0_i32_14 : i32
    scf.if %25 {
      %c0_15 = arith.constant 0 : index
      %c0_16 = arith.constant 0 : index
      %26 = vector.load %arg8[%c0_15, %c0_16] : memref<8x128xf32, #tpu.memory_space<vmem>>, vector<8x128xf32>
      %c0_17 = arith.constant 0 : index
      %c0_18 = arith.constant 0 : index
      %27 = vector.load %arg5[%c0_17, %c0_18] : memref<128x128xf32, #tpu.memory_space<vmem>>, vector<128x128xf32>
      %cst_19 = arith.constant dense<0.000000e+00> : vector<8x128xf32>
      %28 = tpu.matmul %26, %27, %cst_19 {dimension_numbers = #tpu.dot_dimension_numbers<[1], [0], [0], [1], [0, 0, 1, 1], [], []>} : vector<8x128xf32>, vector<128x128xf32>, vector<8x128xf32> -> vector<8x128xf32>
      %c0_20 = arith.constant 0 : index
      %c0_21 = arith.constant 0 : index
      %29 = vector.load %arg6[%c0_20, %c0_21] : memref<1x128xf32, #tpu.memory_space<vmem>>, vector<1x128xf32>
      %30 = vector.broadcast %29 : vector<1x128xf32> to vector<8x128xf32>
      %31 = arith.addf %28, %30 : vector<8x128xf32>
      %c0_22 = arith.constant 0 : index
      %c0_23 = arith.constant 0 : index
      %32 = vector.load %arg7[%c0_22, %c0_23] : memref<8x128xf32, #tpu.memory_space<vmem>>, vector<8x128xf32>
      tpu.vector_store %arg7[%c0_22, %c0_23], %31 {strides = array<i32>} : memref<8x128xf32, #tpu.memory_space<vmem>>, vector<8x128xf32>,
    } else {
    }
    return
  }
  func.func @transform_0(%arg0: i32, %arg1: i32) -> (i32, i32, i32, i32) {
    %c0_i32 = arith.constant 0 : i32
    %c0_i32_0 = arith.constant 0 : i32
    %c0_i32_1 = arith.constant 0 : i32
    return %arg0, %arg1, %c0_i32, %c0_i32_0 : i32, i32, i32, i32
  }
  func.func @transform_1(%arg0: i32, %arg1: i32) -> (i32, i32) {
    %c0_i32 = arith.constant 0 : i32
    %c0_i32_0 = arith.constant 0 : i32
    %c0_i32_1 = arith.constant 0 : i32
    return %c0_i32, %c0_i32_0 : i32, i32
  }
  func.func @transform_2(%arg0: i32, %arg1: i32) -> (i32, i32) {
    %c0_i32 = arith.constant 0 : i32
    %c0_i32_0 = arith.constant 0 : i32
    %c0_i32_1 = arith.constant 0 : i32
    return %c0_i32, %c0_i32_0 : i32, i32
  }
  func.func @transform_3(%arg0: i32, %arg1: i32) -> (i32, i32) {
    %c0_i32 = arith.constant 0 : i32
    %c0_i32_0 = arith.constant 0 : i32
    %c0_i32_1 = arith.constant 0 : i32
    return %c0_i32, %c0_i32_0 : i32, i32
  }
  func.func @transform_4(%arg0: i32, %arg1: i32) -> (i32, i32) {
    %c0_i32 = arith.constant 0 : i32
    %c0_i32_0 = arith.constant 0 : i32
    %c0_i32_1 = arith.constant 0 : i32
    return %c0_i32, %c0_i32_0 : i32, i32
  }
  func.func @transform_5(%arg0: i32, %arg1: i32) -> (i32, i32) {
    %c0_i32 = arith.constant 0 : i32
    %c0_i32_0 = arith.constant 0 : i32
    return %arg0, %c0_i32 : i32, i32
  }
}

</mosaic_0001>

<bundles_post_ra>
// kernel: tpu_custom_call.1
= control target key start
LH: loop header
LB: loop body
LE: loop exit
PB: predicated region body
PF: predicated region fallthrough
CT: control target
= control target key end

     0   :  { %10 = vsyncpa [#allocation4], 0  ;;  %s1018_s0 = inlined_call_operand.vmem [shape: s32[1,2,64,1], index: 0, kind: input, shape index: {}]   ;;  %s1019_s1 = inlined_call_operand.hbm [shape: bf16[128,128], index: 1, kind: input, shape index: {}]   ;;  %s1020_s2 = inlined_call_operand.vmem [shape: f32[1,128], index: 2, kind: input, shape index: {}]   ;;  %s1021_s3 = inlined_call_operand.vmem [shape: f32[128,128], index: 3, kind: input, shape index: {}]   ;;  %s1022_s4 = inlined_call_operand.vmem [shape: f32[1,128], index: 4, kind: input, shape index: {}]   ;;  %s1023_s5 = inlined_call_operand.hbm [shape: f32[8,128], index: 5, kind: output, shape index: {}]  }
   0x1   :  { %11 = vsyncpa [#allocation5], 0  ;;  %s907_s18 = smov 0   ;;  %s909_s19 = smov 0  }
   0x2   :  { %s911_s20 = smov 0  }
   0x3 LB: > { %s633_s21 = sadd.s32 4294967295, %s868_s20   ;;  %s26_s22 = sadd.s32 1, %s864_s19  ;;  %s868_s20 = sphi %s911_s20, %s17_s20   ;;  %s864_s19 = sphi %s909_s19, %s1025_s19   ;;  %s860_s18 = sphi %s907_s18, %s1024_s18  }
   0x4   : > { %p27_p0 = scmp.ge.s32.totalorder %s26_s22, 2  ;;  %p634_p1 = scmp.ge.s32.totalorder %s868_s20, 1 }
   0x5   : > { %p172_p2 = scmp.lt.s32.totalorder %s868_s20, 3  ;;  %p740_p4 = scmp.eq.s32.totalorder %s633_s21, 0 }
   0x6   : > { %s1027_s22 = smov (%p27_p0, %s26_s22), 0  ;;  %s183_s25 = sshll.u32 %s1019_s1, 4  ;;  %s184_s25 = int_to_ptr.hbm [resolvable:$true] %s183_s25 }
   0x7   : > { %p173_p3 = pnand %p634_p1, %p172_p2  ;;  %s870_s26 = smov [#allocation3]  }
   0x8   : > { %s185_s27 = sshll.u32 %s870_s26, 4  ;;  %s871_s28 = smov 64   ;;  %s186_s27 = int_to_ptr.vmem [resolvable:$true] %s185_s27 }
   0x9   : > { %p736_p5 = pneg %p173_p3  ;;  %s872_s29 = smov 4  }
   0xa   : > { %222 = sbr.rel (%p173_p3) target bundleno = 486 (0x1e6), region = 40 }
   0xb   : > { %p737_p6 = pnand %p740_p4, %p736_p5 }
   0xd   : > { %739 = dma.hbm_to_vmem [thread:$0]  (!%p737_p6), %s184_s25, 1024, %s186_s27, [#allocation4], %s871_s28, %s871_s28, %s872_s29  }
   0xf   : > { %851 = dma.done.wait (%p740_p4), [#allocation4], 1024  }
  0x10   : > { %853 = vsyncadd (%p740_p4), [#allocation4], 4294966272  ;;  %p252_p7 = scmp.lt.s32.totalorder %s860_s18, 1  ;;  %p641_p8 = scmp.ne.s32.totalorder %s860_s18, 0 }
  0x12   : > { %s253_s30 = scalar_select %p252_p7, %s860_s18, 1 }
  0x13   : > { %262 = sbr.rel (%p641_p8) target bundleno = 26 (0x1a), region = 48 }
  0x14   : > { %s695_s6 = sshll.u32 %s253_s30, 6 }
  0x15   : > { %s938_s9 = scalar_lea.vmem %s1018_s0, %s695_s6 }
  0x18   : > { %v873_v0 = vmov 0.0  }
  0x19   : > { %263 = vst [vmem:[#allocation2] sm:$0xff] %v873_v0 }
  0x1a PF: > { %v268_v1 = vld [vmem:[%s938_s9 + $0x20] sm:$0xff]  ;;  %v874_v3 = vmov 0   ;;  %v270_v4 = vld [vmem:[%s938_s9 + $0x30] sm:$0xff]  ;;  %v702_v6 = vld [vmem:[#allocation3 + $0x30] sm:$0xff]  ;;  %v272_v18 = vlaneseq  ;;  %v875_v22 = vmov 1.0|1.0  }
  0x1b   : > { %v264_v2 = vld [vmem:[%s938_s9] sm:$0xff]  ;;  %776 = vset.pattern.permute.xlu1 %v874_v3  ;;  %775 = vset.pattern.permute.xlu0 %v874_v3  ;;  %v269_v7 = vld [vmem:[%s938_s9 + $0x28] sm:$0xff]  ;;  %v701_v9 = vld [vmem:[#allocation3 + $0x28] sm:$0xff]  ;;  %vm488_vm12 = vcmask 1041409   ;;  %vm490_vm13 = vcmask 1042434   ;;  %vm492_vm14 = vcmask 1043459  }
  0x1c   : > { %287 = vperm.xlu0 %775, %v268_v1   ;;  %275 = vperm.xlu1 %776, %v264_v2   ;;  %v703_v5 = vld [vmem:[#allocation3 + $0x38] sm:$0xff]  ;;  %v265_v8 = vld [vmem:[%s938_s9 + $0x8] sm:$0xff]  ;;  %v271_v10 = vld [vmem:[%s938_s9 + $0x38] sm:$0xff]  ;;  %v273_v20 = vand.u32 127, %v272_v18  ;;  %vm494_vm15 = vcmask 1044484   ;;  %p690_p9 = scmp.ne.s32.totalorder %s860_s18, 1 }
  0x1d   : > { %777 = vset.pattern.permute.xlu2 %v874_v3  ;;  %706 = vmatpush.bf16.msra.mxu3 %v703_v5  ;;  %v700_v11 = vld [vmem:[#allocation3 + $0x20] sm:$0xff]  ;;  %v266_v12 = vld [vmem:[%s938_s9 + $0x10] sm:$0xff]  ;;  %v267_v13 = vld [vmem:[%s938_s9 + $0x18] sm:$0xff] }
  0x1e   : > { %293 = vperm.xlu2 %777, %v270_v4   ;;  %394 = vmatpush.bf16.msra.mxu0 %v703_v5  ;;  %v699_v14 = vld [vmem:[#allocation3 + $0x18] sm:$0xff]  ;;  %v698_v15 = vld [vmem:[#allocation3 + $0x10] sm:$0xff]  ;;  %v697_v16 = vld [vmem:[#allocation3 + $0x8] sm:$0xff] }
  0x1f   : > { %705 = vmatpush.bf16.msra.mxu2 %v703_v5  ;;  %704 = vmatpush.bf16.msra.mxu1 %v703_v5  ;;  %v696_v17 = vld [vmem:[#allocation3] sm:$0xff]  ;;  %v778_v30 = vld [vmem:[%s1020_s2] ss:$0 sm:$0xff] }
  0x21   : > { %709 = vmatpush.bf16.msra.mxu3 %v702_v6 }
  0x22   : > { %395 = vmatpush.bf16.msra.mxu0 %v702_v6 }
  0x23   : > { %708 = vmatpush.bf16.msra.mxu2 %v702_v6  ;;  %707 = vmatpush.bf16.msra.mxu1 %v702_v6 }
  0x24   : > { %290 = vperm.xlu0 %775, %v269_v7   ;;  %278 = vperm.xlu1 %776, %v265_v8  }
  0x25   : > { %712 = vmatpush.bf16.msra.mxu3 %v701_v9 }
  0x26   : > { %296 = vperm.xlu2 %777, %v271_v10   ;;  %396 = vmatpush.bf16.msra.mxu0 %v701_v9 }
  0x27   : > { %711 = vmatpush.bf16.msra.mxu2 %v701_v9  ;;  %710 = vmatpush.bf16.msra.mxu1 %v701_v9 }
  0x29   : > { %715 = vmatpush.bf16.msra.mxu3 %v700_v11 }
  0x2a   : > { %397 = vmatpush.bf16.msra.mxu0 %v700_v11 }
  0x2b   : > { %714 = vmatpush.bf16.msra.mxu2 %v700_v11  ;;  %713 = vmatpush.bf16.msra.mxu1 %v700_v11 }
  0x2c   : > { %281 = vperm.xlu0 %775, %v266_v12   ;;  %284 = vperm.xlu1 %776, %v267_v13  }
  0x2d   : > { %718 = vmatpush.bf16.msra.mxu3 %v699_v14 }
  0x2e   : > { %398 = vmatpush.bf16.msra.mxu0 %v699_v14 }
  0x2f   : > { %717 = vmatpush.bf16.msra.mxu2 %v699_v14  ;;  %716 = vmatpush.bf16.msra.mxu1 %v699_v14 }
  0x31   : > { %721 = vmatpush.bf16.msra.mxu3 %v698_v15 }
  0x32   : > { %399 = vmatpush.bf16.msra.mxu0 %v698_v15 }
  0x33   : > { %720 = vmatpush.bf16.msra.mxu2 %v698_v15  ;;  %719 = vmatpush.bf16.msra.mxu1 %v698_v15 }
  0x35   : > { %724 = vmatpush.bf16.msra.mxu3 %v697_v16 }
  0x36   : > { %400 = vmatpush.bf16.msra.mxu0 %v697_v16 }
  0x37   : > { %723 = vmatpush.bf16.msra.mxu2 %v697_v16  ;;  %722 = vmatpush.bf16.msra.mxu1 %v697_v16 }
  0x39   : > { %727 = vmatpush.bf16.msra.mxu3 %v696_v17 }
  0x3a   : > { %401 = vmatpush.bf16.msra.mxu0 %v696_v17 }
  0x3b   : > { %726 = vmatpush.bf16.msra.mxu2 %v696_v17  ;;  %725 = vmatpush.bf16.msra.mxu1 %v696_v17 }
  0x78   : > { %v294_v19 = vpop.permute.xlu2 %293 }
  0x79   : > { %vm304_vm0 = vcmp.eq.s32.totalorder %v294_v19, %v273_v20 }
  0x80   : > { %v297_v21 = vpop.permute.xlu2 %296 }
  0x81   : > { %vm305_vm1 = vcmp.eq.s32.totalorder %v297_v21, %v273_v20 }
  0x82   : > { %vm688_vm2 = vmpackc.low %vm305_vm1, %vm304_vm0  ;;  %vm496_vm0 = vcmask 1045509   ;;  %vm498_vm1 = vcmask 1046534  }
  0x83   : > { %689 = vmatmul.msk.bf16.vlgmr.msra.gmra.mxu3 %vm688_vm2, %v875_v22  ;;  %vm500_vm2 = vcmask 1047559  }
  0x8e   : > { %v288_v23 = vpop.permute.xlu0 %287  ;;  %v276_v24 = vpop.permute.xlu1 %275 }
  0x8f   : > { %vm302_vm3 = vcmp.eq.s32.totalorder %v288_v23, %v273_v20  ;;  %vm298_vm6 = vcmp.eq.s32.totalorder %v276_v24, %v273_v20 }
  0x96   : > { %v291_v25 = vpop.permute.xlu0 %290  ;;  %v279_v26 = vpop.permute.xlu1 %278 }
  0x97   : > { %vm303_vm4 = vcmp.eq.s32.totalorder %v291_v25, %v273_v20  ;;  %vm299_vm5 = vcmp.eq.s32.totalorder %v279_v26, %v273_v20 }
  0x98   : > { %vm686_vm7 = vmpackc.low %vm303_vm4, %vm302_vm3 }
  0x99   : > { %vm682_vm8 = vmpackc.low %vm299_vm5, %vm298_vm6  ;;  %687 = vmatmul.msk.bf16.vlgmr.msra.gmra.mxu2 %vm686_vm7, %v875_v22 }
  0x9a   : > { %683 = vmatmul.msk.bf16.vlgmr.msra.gmra.mxu0 %vm682_vm8, %v875_v22 }
  0x9e   : > { %v282_v27 = vpop.permute.xlu0 %281  ;;  %v285_v28 = vpop.permute.xlu1 %284 }
  0x9f   : > { %vm300_vm9 = vcmp.eq.s32.totalorder %v282_v27, %v273_v20  ;;  %vm301_vm10 = vcmp.eq.s32.totalorder %v285_v28, %v273_v20 }
  0xa0   : > { %vm684_vm11 = vmpackc.low %vm301_vm10, %vm300_vm9 }
  0xa1   : > { %685 = vmatmul.msk.bf16.vlgmr.msra.gmra.mxu1 %vm684_vm11, %v875_v22 }
 0x106   : > { %v418_v29 = vpop.f32.mrf.mxu3 }
 0x107   : > { %v419_v35 = vadd.f32 %v778_v30, %v418_v29 }
 0x109   : > { %v429_v44 = vmax.f32 %v419_v35, 0.0 }
 0x10b   : > { %v468_v52 = vrot.slane %v429_v44, 4 }
 0x10d   : > { %v469_v1 = vmax.f32 %v429_v44, %v468_v52 }
 0x10e   : > { %v420_v33 = vpop.f32.mrf.mxu3 }
 0x10f   : > { %v421_v37 = vadd.f32 %v778_v30, %v420_v33  ;;  %v470_v12 = vrot.slane %v469_v1, 2 }
 0x111   : > { %v430_v46 = vmax.f32 %v421_v37, 0.0  ;;  %v471_v23 = vmax.f32 %v469_v1, %v470_v12 }
 0x113   : > { %v474_v55 = vrot.slane %v430_v46, 4 }
 0x115   : > { %v475_v3 = vmax.f32 %v430_v46, %v474_v55 }
 0x117   : > { %v403_v31 = vpop.f32.mrf.mxu0  ;;  %v476_v14 = vrot.slane %v475_v3, 2 }
 0x118   : > { %v404_v32 = vadd.f32 %v778_v30, %v403_v31 }
 0x119   : > { %v477_v24 = vmax.f32 %v475_v3, %v476_v14 }
 0x11a   : > { %v423_v34 = vmax.f32 %v404_v32, 0.0  ;;  %v472_v32 = vrot.slane %v471_v23, 1 }
 0x11b   : > { %v478_v33 = vrot.slane %v477_v24, 1 }
 0x11c   : > { %v413_v36 = vpop.f32.mrf.mxu2  ;;  %v432_v38 = vrot.slane %v423_v34, 4 }
 0x11d   : > { %v414_v39 = vadd.f32 %v778_v30, %v413_v36 }
 0x11e   : > { %v408_v40 = vpop.f32.mrf.mxu1  ;;  %v433_v47 = vmax.f32 %v423_v34, %v432_v38 }
 0x11f   : > { %v427_v41 = vmax.f32 %v414_v39, 0.0  ;;  %v405_v42 = vpop.f32.mrf.mxu0  ;;  %v409_v43 = vadd.f32 %v778_v30, %v408_v40  ;;  %v473_v39 = vmax.f32 %v471_v23, %v472_v32 }
 0x120   : > { %v406_v45 = vadd.f32 %v778_v30, %v405_v42  ;;  %v434_v56 = vrot.slane %v433_v47, 2  ;;  %v431_v42 = vld [vmem:[#allocation2] sm:$0xff] }
 0x121   : > { %v425_v48 = vmax.f32 %v409_v43, 0.0  ;;  %v456_v49 = vrot.slane %v427_v41, 4 }
 0x122   : > { %v424_v50 = vmax.f32 %v406_v45, 0.0  ;;  %v435_v4 = vmax.f32 %v433_v47, %v434_v56 }
 0x123   : > { %v444_v51 = vrot.slane %v425_v48, 4  ;;  %v457_v59 = vmax.f32 %v427_v41, %v456_v49  ;;  %v479_v41 = vmax.f32 %v477_v24, %v478_v33 }
 0x124   : > { %v438_v53 = vrot.slane %v424_v50, 4  ;;  %v415_v54 = vpop.f32.mrf.mxu2  ;;  %v436_v15 = vrot.slane %v435_v4, 1 }
 0x125   : > { %v445_v57 = vmax.f32 %v425_v48, %v444_v51  ;;  %v416_v58 = vadd.f32 %v778_v30, %v415_v54  ;;  %v458_v7 = vrot.slane %v457_v59, 2 }
 0x126   : > { %v439_v60 = vmax.f32 %v424_v50, %v438_v53  ;;  %v410_v61 = vpop.f32.mrf.mxu1  ;;  %v437_v25 = vmax.f32 %v435_v4, %v436_v15 }
 0x127   : > { %v446_v62 = vrot.slane %v445_v57, 2  ;;  %v428_v63 = vmax.f32 %v416_v58, 0.0  ;;  %v411_v0 = vadd.f32 %v778_v30, %v410_v61  ;;  %v459_v18 = vmax.f32 %v457_v59, %v458_v7 }
 0x128   : > { %v440_v2 = vrot.slane %v439_v60, 2 }
 0x129   : > { %v462_v5 = vrot.slane %v428_v63, 4  ;;  %v426_v6 = vmax.f32 %v411_v0, 0.0  ;;  %v447_v9 = vmax.f32 %v445_v57, %v446_v62  ;;  %v460_v27 = vrot.slane %v459_v18, 1 }
 0x12a   : > { %v441_v8 = vmax.f32 %v439_v60, %v440_v2 }
 0x12b   : > { %v463_v10 = vmax.f32 %v428_v63, %v462_v5  ;;  %v450_v11 = vrot.slane %v426_v6, 4  ;;  %v448_v19 = vrot.slane %v447_v9, 1  ;;  %v461_v35 = vmax.f32 %v459_v18, %v460_v27 }
 0x12c   : > { %v442_v13 = vrot.slane %v441_v8, 1 }
 0x12d   : > { %v464_v16 = vrot.slane %v463_v10, 2  ;;  %v451_v17 = vmax.f32 %v426_v6, %v450_v11  ;;  %v449_v28 = vmax.f32 %v447_v9, %v448_v19 }
 0x12e   : > { %v443_v20 = vmax.f32 %v441_v8, %v442_v13 }
 0x12f   : > { %v465_v21 = vmax.f32 %v463_v10, %v464_v16  ;;  %v452_v22 = vrot.slane %v451_v17, 2 }
 0x130   : > { %v489_v29 = vsel %vm488_vm12, %v443_v20, %v437_v25 }
 0x131   : > { %v453_v26 = vmax.f32 %v451_v17, %v452_v22  ;;  %v466_v30 = vrot.slane %v465_v21, 1  ;;  %v491_v36 = vsel %vm490_vm13, %v449_v28, %v489_v29 }
 0x133   : > { %v454_v31 = vrot.slane %v453_v26, 1  ;;  %v467_v37 = vmax.f32 %v465_v21, %v466_v30 }
 0x135   : > { %v455_v34 = vmax.f32 %v453_v26, %v454_v31 }
 0x137   : > { %v493_v38 = vsel %vm492_vm14, %v455_v34, %v491_v36 }
 0x138   : > { %v495_v40 = vsel %vm494_vm15, %v461_v35, %v493_v38 }
 0x139   : > { %v497_v43 = vsel %vm496_vm0, %v467_v37, %v495_v40 }
 0x13a   : > { %v499_v44 = vsel %vm498_vm1, %v473_v39, %v497_v43  ;;  %508 = sbr.rel (%p690_p9) target bundleno = 480 (0x1e0), region = 52 }
 0x13b   : > { %v501_v45 = vsel %vm500_vm2, %v479_v41, %v499_v44 }
 0x13c   : > { %v503_v46 = vmax.f32 %v431_v42, %v501_v45 }
 0x13e   : > { %504 = vst [vmem:[#allocation2] sm:$0xff] %v503_v46 }
 0x13f   : > { %v525_v47 = vld [vmem:[%s1021_s3 + $0x78] sm:$0xff]  ;;  %v524_v48 = vld [vmem:[%s1021_s3 + $0x70] sm:$0xff]  ;;  %v523_v49 = vld [vmem:[%s1021_s3 + $0x68] sm:$0xff] }
 0x140   : > { %530 = vmatpush.msra.mxu0 %v525_v47  ;;  %v522_v50 = vld [vmem:[%s1021_s3 + $0x60] sm:$0xff]  ;;  %v521_v51 = vld [vmem:[%s1021_s3 + $0x58] sm:$0xff]  ;;  %v520_v52 = vld [vmem:[%s1021_s3 + $0x50] sm:$0xff] }
 0x141   : > { %v519_v53 = vld [vmem:[%s1021_s3 + $0x48] sm:$0xff]  ;;  %v518_v54 = vld [vmem:[%s1021_s3 + $0x40] sm:$0xff]  ;;  %v517_v55 = vld [vmem:[%s1021_s3 + $0x38] sm:$0xff] }
 0x142   : > { %531 = vmatpush.msra.mxu0 %v524_v48  ;;  %v516_v56 = vld [vmem:[%s1021_s3 + $0x30] sm:$0xff]  ;;  %v515_v57 = vld [vmem:[%s1021_s3 + $0x28] sm:$0xff]  ;;  %v514_v58 = vld [vmem:[%s1021_s3 + $0x20] sm:$0xff] }
 0x143   : > { %v513_v59 = vld [vmem:[%s1021_s3 + $0x18] sm:$0xff]  ;;  %v512_v60 = vld [vmem:[%s1021_s3 + $0x10] sm:$0xff]  ;;  %v511_v61 = vld [vmem:[%s1021_s3 + $0x8] sm:$0xff] }
 0x144   : > { %532 = vmatpush.msra.mxu0 %v523_v49  ;;  %v510_v62 = vld [vmem:[%s1021_s3] sm:$0xff] }
 0x145   : > { %v509_v63 = vld [vmem:[#allocation2] sm:$0xff] }
 0x146   : > { %533 = vmatpush.msra.mxu0 %v522_v50  ;;  %v779_v0 = vld [vmem:[%s1022_s4] ss:$0 sm:$0xff] }
 0x148   : > { %534 = vmatpush.msra.mxu0 %v521_v51 }
 0x14a   : > { %535 = vmatpush.msra.mxu0 %v520_v52 }
 0x14c   : > { %536 = vmatpush.msra.mxu0 %v519_v53 }
 0x14e   : > { %537 = vmatpush.msra.mxu0 %v518_v54 }
 0x150   : > { %538 = vmatpush.msra.mxu0 %v517_v55 }
 0x152   : > { %539 = vmatpush.msra.mxu0 %v516_v56 }
 0x154   : > { %540 = vmatpush.msra.mxu0 %v515_v57 }
 0x156   : > { %541 = vmatpush.msra.mxu0 %v514_v58 }
 0x158   : > { %542 = vmatpush.msra.mxu0 %v513_v59 }
 0x15a   : > { %543 = vmatpush.msra.mxu0 %v512_v60 }
 0x15c   : > { %544 = vmatpush.msra.mxu0 %v511_v61 }
 0x15e   : > { %545 = vmatpush.msra.mxu0 %v510_v62 }
 0x15f   : > { %546 = vmatmul.f32.vlgmr.msra.gmra.mxu0 %v509_v63 }
 0x1dc   : > { %v547_v1 = vpop.f32.mrf.mxu0 }
 0x1dd   : > { %v548_v2 = vadd.f32 %v779_v0, %v547_v1 }
 0x1df   : > { %550 = vst [vmem:[#allocation6] sm:$0xff] %v548_v2 }
 0x1e0 PF: > { %p742_p10 = scmp.eq.s32.totalorder %s633_s21, 1  ;;  %s561_s6 = sshll.u32 %s1023_s5, 4  ;;  %s562_s6 = int_to_ptr.hbm [resolvable:$true] %s561_s6 }
 0x1e1   : > { %s876_s7 = smov [#allocation6]  }
 0x1e2   : > { %s559_s8 = sshll.u32 %s876_s7, 4  ;;  %s560_s8 = int_to_ptr.vmem [resolvable:$true] %s559_s8 }
 0x1e3   : > { %733 = dma.vmem_to_hbm [thread:$0]  (%p742_p10), %s560_s8, 128, %s562_s6, [#allocation5]  }
 0x1e4   : > { %855 = dma.done.wait (%p742_p10), [#allocation5], 128  }
 0x1e5   : > { %857 = vsyncadd (%p742_p10), [#allocation5], 4294967168 }
 0x1e6 PF: > { %s17_s20 = sadd.s32 1, %s868_s20   ;;  %s1024_s18 = smov %s864_s19 }
 0x1e7   : > { %p14_p11 = scmp.ge.s32.totalorder %s17_s20, 4   ;;  %s1025_s19 = smov %s1027_s22 }
 0x1e9   :  { %16 = sbr.rel (!%p14_p11) target bundleno = 3 (0x3), region = 81 }
 0x1ee   :  { %575 = vsyncpa [#allocation4], 1 }
 0x1ef   :  { %577 = vsyncpa [#allocation4 + $0x1], 1 }
 0x1f0   :  { %578 = vsyncpa [#allocation5], 1 }
 0x1f1   :  { %580 = vsyncpa [#allocation5 + $0x1], 1 }

// kernel: tpu_custom_call.1
= control target key start
LH: loop header
LB: loop body
LE: loop exit
PB: predicated region body
PF: predicated region fallthrough
CT: control target
= control target key end

     0   :  { %10 = vsyncpa [#allocation4], 0  ;;  %s1018_s0 = inlined_call_operand.vmem [shape: s32[1,2,64,1], index: 0, kind: input, shape index: {}]   ;;  %s1019_s1 = inlined_call_operand.hbm [shape: bf16[128,128], index: 1, kind: input, shape index: {}]   ;;  %s1020_s2 = inlined_call_operand.vmem [shape: f32[1,128], index: 2, kind: input, shape index: {}]   ;;  %s1021_s3 = inlined_call_operand.vmem [shape: f32[128,128], index: 3, kind: input, shape index: {}]   ;;  %s1022_s4 = inlined_call_operand.vmem [shape: f32[1,128], index: 4, kind: input, shape index: {}]   ;;  %s1023_s5 = inlined_call_operand.hbm [shape: f32[8,128], index: 5, kind: output, shape index: {}]  }
   0x1   :  { %11 = vsyncpa [#allocation5], 0  ;;  %s907_s18 = smov 0   ;;  %s909_s19 = smov 0  }
   0x2   :  { %s911_s20 = smov 0  }
   0x3 LB: > { %s633_s21 = sadd.s32 4294967295, %s868_s20   ;;  %s26_s22 = sadd.s32 1, %s864_s19  ;;  %s868_s20 = sphi %s911_s20, %s17_s20   ;;  %s864_s19 = sphi %s909_s19, %s1025_s19   ;;  %s860_s18 = sphi %s907_s18, %s1024_s18  }
   0x4   : > { %p27_p0 = scmp.ge.s32.totalorder %s26_s22, 2  ;;  %p634_p1 = scmp.ge.s32.totalorder %s868_s20, 1 }
   0x5   : > { %p172_p2 = scmp.lt.s32.totalorder %s868_s20, 3  ;;  %p740_p4 = scmp.eq.s32.totalorder %s633_s21, 0 }
   0x6   : > { %s1027_s22 = smov (%p27_p0, %s26_s22), 0  ;;  %s183_s25 = sshll.u32 %s1019_s1, 4  ;;  %s184_s25 = int_to_ptr.hbm [resolvable:$true] %s183_s25 }
   0x7   : > { %p173_p3 = pnand %p634_p1, %p172_p2  ;;  %s870_s26 = smov [#allocation3]  }
   0x8   : > { %s185_s27 = sshll.u32 %s870_s26, 4  ;;  %s871_s28 = smov 64   ;;  %s186_s27 = int_to_ptr.vmem [resolvable:$true] %s185_s27 }
   0x9   : > { %p736_p5 = pneg %p173_p3  ;;  %s872_s29 = smov 4  }
   0xa   : > { %222 = sbr.rel (%p173_p3) target bundleno = 486 (0x1e6), region = 40 }
   0xb   : > { %p737_p6 = pnand %p740_p4, %p736_p5 }
   0xd   : > { %739 = dma.hbm_to_vmem [thread:$0]  (!%p737_p6), %s184_s25, 1024, %s186_s27, [#allocation4], %s871_s28, %s871_s28, %s872_s29  }
   0xf   : > { %851 = dma.done.wait (%p740_p4), [#allocation4], 1024  }
  0x10   : > { %853 = vsyncadd (%p740_p4), [#allocation4], 4294966272  ;;  %p252_p7 = scmp.lt.s32.totalorder %s860_s18, 1  ;;  %p641_p8 = scmp.ne.s32.totalorder %s860_s18, 0 }
  0x12   : > { %s253_s30 = scalar_select %p252_p7, %s860_s18, 1 }
  0x13   : > { %262 = sbr.rel (%p641_p8) target bundleno = 26 (0x1a), region = 48 }
  0x14   : > { %s695_s6 = sshll.u32 %s253_s30, 6 }
  0x15   : > { %s938_s9 = scalar_lea.vmem %s1018_s0, %s695_s6 }
  0x18   : > { %v873_v0 = vmov 0.0  }
  0x19   : > { %263 = vst [vmem:[#allocation2] sm:$0xff] %v873_v0 }
  0x1a PF: > { %v268_v1 = vld [vmem:[%s938_s9 + $0x20] sm:$0xff]  ;;  %v874_v3 = vmov 0   ;;  %v270_v4 = vld [vmem:[%s938_s9 + $0x30] sm:$0xff]  ;;  %v702_v6 = vld [vmem:[#allocation3 + $0x30] sm:$0xff]  ;;  %v272_v18 = vlaneseq  ;;  %v875_v22 = vmov 1.0|1.0  }
  0x1b   : > { %v264_v2 = vld [vmem:[%s938_s9] sm:$0xff]  ;;  %776 = vset.pattern.permute.xlu1 %v874_v3  ;;  %775 = vset.pattern.permute.xlu0 %v874_v3  ;;  %v269_v7 = vld [vmem:[%s938_s9 + $0x28] sm:$0xff]  ;;  %v701_v9 = vld [vmem:[#allocation3 + $0x28] sm:$0xff]  ;;  %vm488_vm12 = vcmask 1041409   ;;  %vm490_vm13 = vcmask 1042434   ;;  %vm492_vm14 = vcmask 1043459  }
  0x1c   : > { %287 = vperm.xlu0 %775, %v268_v1   ;;  %275 = vperm.xlu1 %776, %v264_v2   ;;  %v703_v5 = vld [vmem:[#allocation3 + $0x38] sm:$0xff]  ;;  %v265_v8 = vld [vmem:[%s938_s9 + $0x8] sm:$0xff]  ;;  %v271_v10 = vld [vmem:[%s938_s9 + $0x38] sm:$0xff]  ;;  %v273_v20 = vand.u32 127, %v272_v18  ;;  %vm494_vm15 = vcmask 1044484   ;;  %p690_p9 = scmp.ne.s32.totalorder %s860_s18, 1 }
  0x1d   : > { %777 = vset.pattern.permute.xlu2 %v874_v3  ;;  %706 = vmatpush.bf16.msra.mxu3 %v703_v5  ;;  %v700_v11 = vld [vmem:[#allocation3 + $0x20] sm:$0xff]  ;;  %v266_v12 = vld [vmem:[%s938_s9 + $0x10] sm:$0xff]  ;;  %v267_v13 = vld [vmem:[%s938_s9 + $0x18] sm:$0xff] }
  0x1e   : > { %293 = vperm.xlu2 %777, %v270_v4   ;;  %394 = vmatpush.bf16.msra.mxu0 %v703_v5  ;;  %v699_v14 = vld [vmem:[#allocation3 + $0x18] sm:$0xff]  ;;  %v698_v15 = vld [vmem:[#allocation3 + $0x10] sm:$0xff]  ;;  %v697_v16 = vld [vmem:[#allocation3 + $0x8] sm:$0xff] }
  0x1f   : > { %705 = vmatpush.bf16.msra.mxu2 %v703_v5  ;;  %704 = vmatpush.bf16.msra.mxu1 %v703_v5  ;;  %v696_v17 = vld [vmem:[#allocation3] sm:$0xff]  ;;  %v778_v30 = vld [vmem:[%s1020_s2] ss:$0 sm:$0xff] }
  0x21   : > { %709 = vmatpush.bf16.msra.mxu3 %v702_v6 }
  0x22   : > { %395 = vmatpush.bf16.msra.mxu0 %v702_v6 }
  0x23   : > { %708 = vmatpush.bf16.msra.mxu2 %v702_v6  ;;  %707 = vmatpush.bf16.msra.mxu1 %v702_v6 }
  0x24   : > { %290 = vperm.xlu0 %775, %v269_v7   ;;  %278 = vperm.xlu1 %776, %v265_v8  }
  0x25   : > { %712 = vmatpush.bf16.msra.mxu3 %v701_v9 }
  0x26   : > { %296 = vperm.xlu2 %777, %v271_v10   ;;  %396 = vmatpush.bf16.msra.mxu0 %v701_v9 }
  0x27   : > { %711 = vmatpush.bf16.msra.mxu2 %v701_v9  ;;  %710 = vmatpush.bf16.msra.mxu1 %v701_v9 }
  0x29   : > { %715 = vmatpush.bf16.msra.mxu3 %v700_v11 }
  0x2a   : > { %397 = vmatpush.bf16.msra.mxu0 %v700_v11 }
  0x2b   : > { %714 = vmatpush.bf16.msra.mxu2 %v700_v11  ;;  %713 = vmatpush.bf16.msra.mxu1 %v700_v11 }
  0x2c   : > { %281 = vperm.xlu0 %775, %v266_v12   ;;  %284 = vperm.xlu1 %776, %v267_v13  }
  0x2d   : > { %718 = vmatpush.bf16.msra.mxu3 %v699_v14 }
  0x2e   : > { %398 = vmatpush.bf16.msra.mxu0 %v699_v14 }
  0x2f   : > { %717 = vmatpush.bf16.msra.mxu2 %v699_v14  ;;  %716 = vmatpush.bf16.msra.mxu1 %v699_v14 }
  0x31   : > { %721 = vmatpush.bf16.msra.mxu3 %v698_v15 }
  0x32   : > { %399 = vmatpush.bf16.msra.mxu0 %v698_v15 }
  0x33   : > { %720 = vmatpush.bf16.msra.mxu2 %v698_v15  ;;  %719 = vmatpush.bf16.msra.mxu1 %v698_v15 }
  0x35   : > { %724 = vmatpush.bf16.msra.mxu3 %v697_v16 }
  0x36   : > { %400 = vmatpush.bf16.msra.mxu0 %v697_v16 }
  0x37   : > { %723 = vmatpush.bf16.msra.mxu2 %v697_v16  ;;  %722 = vmatpush.bf16.msra.mxu1 %v697_v16 }
  0x39   : > { %727 = vmatpush.bf16.msra.mxu3 %v696_v17 }
  0x3a   : > { %401 = vmatpush.bf16.msra.mxu0 %v696_v17 }
  0x3b   : > { %726 = vmatpush.bf16.msra.mxu2 %v696_v17  ;;  %725 = vmatpush.bf16.msra.mxu1 %v696_v17 }
  0x78   : > { %v294_v19 = vpop.permute.xlu2 %293 }
  0x79   : > { %vm304_vm0 = vcmp.eq.s32.totalorder %v294_v19, %v273_v20 }
  0x80   : > { %v297_v21 = vpop.permute.xlu2 %296 }
  0x81   : > { %vm305_vm1 = vcmp.eq.s32.totalorder %v297_v21, %v273_v20 }
  0x82   : > { %vm688_vm2 = vmpackc.low %vm305_vm1, %vm304_vm0  ;;  %vm496_vm0 = vcmask 1045509   ;;  %vm498_vm1 = vcmask 1046534  }
  0x83   : > { %689 = vmatmul.msk.bf16.vlgmr.msra.gmra.mxu3 %vm688_vm2, %v875_v22  ;;  %vm500_vm2 = vcmask 1047559  }
  0x8e   : > { %v288_v23 = vpop.permute.xlu0 %287  ;;  %v276_v24 = vpop.permute.xlu1 %275 }
  0x8f   : > { %vm302_vm3 = vcmp.eq.s32.totalorder %v288_v23, %v273_v20  ;;  %vm298_vm6 = vcmp.eq.s32.totalorder %v276_v24, %v273_v20 }
  0x96   : > { %v291_v25 = vpop.permute.xlu0 %290  ;;  %v279_v26 = vpop.permute.xlu1 %278 }
  0x97   : > { %vm303_vm4 = vcmp.eq.s32.totalorder %v291_v25, %v273_v20  ;;  %vm299_vm5 = vcmp.eq.s32.totalorder %v279_v26, %v273_v20 }
  0x98   : > { %vm686_vm7 = vmpackc.low %vm303_vm4, %vm302_vm3 }
  0x99   : > { %vm682_vm8 = vmpackc.low %vm299_vm5, %vm298_vm6  ;;  %687 = vmatmul.msk.bf16.vlgmr.msra.gmra.mxu2 %vm686_vm7, %v875_v22 }
  0x9a   : > { %683 = vmatmul.msk.bf16.vlgmr.msra.gmra.mxu0 %vm682_vm8, %v875_v22 }
  0x9e   : > { %v282_v27 = vpop.permute.xlu0 %281  ;;  %v285_v28 = vpop.permute.xlu1 %284 }
  0x9f   : > { %vm300_vm9 = vcmp.eq.s32.totalorder %v282_v27, %v273_v20  ;;  %vm301_vm10 = vcmp.eq.s32.totalorder %v285_v28, %v273_v20 }
  0xa0   : > { %vm684_vm11 = vmpackc.low %vm301_vm10, %vm300_vm9 }
  0xa1   : > { %685 = vmatmul.msk.bf16.vlgmr.msra.gmra.mxu1 %vm684_vm11, %v875_v22 }
 0x106   : > { %v418_v29 = vpop.f32.mrf.mxu3 }
 0x107   : > { %v419_v35 = vadd.f32 %v778_v30, %v418_v29 }
 0x109   : > { %v429_v44 = vmax.f32 %v419_v35, 0.0 }
 0x10b   : > { %v468_v52 = vrot.slane %v429_v44, 4 }
 0x10d   : > { %v469_v1 = vmax.f32 %v429_v44, %v468_v52 }
 0x10e   : > { %v420_v33 = vpop.f32.mrf.mxu3 }
 0x10f   : > { %v421_v37 = vadd.f32 %v778_v30, %v420_v33  ;;  %v470_v12 = vrot.slane %v469_v1, 2 }
 0x111   : > { %v430_v46 = vmax.f32 %v421_v37, 0.0  ;;  %v471_v23 = vmax.f32 %v469_v1, %v470_v12 }
 0x113   : > { %v474_v55 = vrot.slane %v430_v46, 4 }
 0x115   : > { %v475_v3 = vmax.f32 %v430_v46, %v474_v55 }
 0x117   : > { %v403_v31 = vpop.f32.mrf.mxu0  ;;  %v476_v14 = vrot.slane %v475_v3, 2 }
 0x118   : > { %v404_v32 = vadd.f32 %v778_v30, %v403_v31 }
 0x119   : > { %v477_v24 = vmax.f32 %v475_v3, %v476_v14 }
 0x11a   : > { %v423_v34 = vmax.f32 %v404_v32, 0.0  ;;  %v472_v32 = vrot.slane %v471_v23, 1 }
 0x11b   : > { %v478_v33 = vrot.slane %v477_v24, 1 }
 0x11c   : > { %v413_v36 = vpop.f32.mrf.mxu2  ;;  %v432_v38 = vrot.slane %v423_v34, 4 }
 0x11d   : > { %v414_v39 = vadd.f32 %v778_v30, %v413_v36 }
 0x11e   : > { %v408_v40 = vpop.f32.mrf.mxu1  ;;  %v433_v47 = vmax.f32 %v423_v34, %v432_v38 }
 0x11f   : > { %v427_v41 = vmax.f32 %v414_v39, 0.0  ;;  %v405_v42 = vpop.f32.mrf.mxu0  ;;  %v409_v43 = vadd.f32 %v778_v30, %v408_v40  ;;  %v473_v39 = vmax.f32 %v471_v23, %v472_v32 }
 0x120   : > { %v406_v45 = vadd.f32 %v778_v30, %v405_v42  ;;  %v434_v56 = vrot.slane %v433_v47, 2  ;;  %v431_v42 = vld [vmem:[#allocation2] sm:$0xff] }
 0x121   : > { %v425_v48 = vmax.f32 %v409_v43, 0.0  ;;  %v456_v49 = vrot.slane %v427_v41, 4 }
 0x122   : > { %v424_v50 = vmax.f32 %v406_v45, 0.0  ;;  %v435_v4 = vmax.f32 %v433_v47, %v434_v56 }
 0x123   : > { %v444_v51 = vrot.slane %v425_v48, 4  ;;  %v457_v59 = vmax.f32 %v427_v41, %v456_v49  ;;  %v479_v41 = vmax.f32 %v477_v24, %v478_v33 }
 0x124   : > { %v438_v53 = vrot.slane %v424_v50, 4  ;;  %v415_v54 = vpop.f32.mrf.mxu2  ;;  %v436_v15 = vrot.slane %v435_v4, 1 }
 0x125   : > { %v445_v57 = vmax.f32 %v425_v48, %v444_v51  ;;  %v416_v58 = vadd.f32 %v778_v30, %v415_v54  ;;  %v458_v7 = vrot.slane %v457_v59, 2 }
 0x126   : > { %v439_v60 = vmax.f32 %v424_v50, %v438_v53  ;;  %v410_v61 = vpop.f32.mrf.mxu1  ;;  %v437_v25 = vmax.f32 %v435_v4, %v436_v15 }
 0x127   : > { %v446_v62 = vrot.slane %v445_v57, 2  ;;  %v428_v63 = vmax.f32 %v416_v58, 0.0  ;;  %v411_v0 = vadd.f32 %v778_v30, %v410_v61  ;;  %v459_v18 = vmax.f32 %v457_v59, %v458_v7 }
 0x128   : > { %v440_v2 = vrot.slane %v439_v60, 2 }
 0x129   : > { %v462_v5 = vrot.slane %v428_v63, 4  ;;  %v426_v6 = vmax.f32 %v411_v0, 0.0  ;;  %v447_v9 = vmax.f32 %v445_v57, %v446_v62  ;;  %v460_v27 = vrot.slane %v459_v18, 1 }
 0x12a   : > { %v441_v8 = vmax.f32 %v439_v60, %v440_v2 }
 0x12b   : > { %v463_v10 = vmax.f32 %v428_v63, %v462_v5  ;;  %v450_v11 = vrot.slane %v426_v6, 4  ;;  %v448_v19 = vrot.slane %v447_v9, 1  ;;  %v461_v35 = vmax.f32 %v459_v18, %v460_v27 }
 0x12c   : > { %v442_v13 = vrot.slane %v441_v8, 1 }
 0x12d   : > { %v464_v16 = vrot.slane %v463_v10, 2  ;;  %v451_v17 = vmax.f32 %v426_v6, %v450_v11  ;;  %v449_v28 = vmax.f32 %v447_v9, %v448_v19 }
 0x12e   : > { %v443_v20 = vmax.f32 %v441_v8, %v442_v13 }
 0x12f   : > { %v465_v21 = vmax.f32 %v463_v10, %v464_v16  ;;  %v452_v22 = vrot.slane %v451_v17, 2 }
 0x130   : > { %v489_v29 = vsel %vm488_vm12, %v443_v20, %v437_v25 }
 0x131   : > { %v453_v26 = vmax.f32 %v451_v17, %v452_v22  ;;  %v466_v30 = vrot.slane %v465_v21, 1  ;;  %v491_v36 = vsel %vm490_vm13, %v449_v28, %v489_v29 }
 0x133   : > { %v454_v31 = vrot.slane %v453_v26, 1  ;;  %v467_v37 = vmax.f32 %v465_v21, %v466_v30 }
 0x135   : > { %v455_v34 = vmax.f32 %v453_v26, %v454_v31 }
 0x137   : > { %v493_v38 = vsel %vm492_vm14, %v455_v34, %v491_v36 }
 0x138   : > { %v495_v40 = vsel %vm494_vm15, %v461_v35, %v493_v38 }
 0x139   : > { %v497_v43 = vsel %vm496_vm0, %v467_v37, %v495_v40 }
 0x13a   : > { %v499_v44 = vsel %vm498_vm1, %v473_v39, %v497_v43  ;;  %508 = sbr.rel (%p690_p9) target bundleno = 480 (0x1e0), region = 52 }
 0x13b   : > { %v501_v45 = vsel %vm500_vm2, %v479_v41, %v499_v44 }
 0x13c   : > { %v503_v46 = vmax.f32 %v431_v42, %v501_v45 }
 0x13e   : > { %504 = vst [vmem:[#allocation2] sm:$0xff] %v503_v46 }
 0x13f   : > { %v525_v47 = vld [vmem:[%s1021_s3 + $0x78] sm:$0xff]  ;;  %v524_v48 = vld [vmem:[%s1021_s3 + $0x70] sm:$0xff]  ;;  %v523_v49 = vld [vmem:[%s1021_s3 + $0x68] sm:$0xff] }
 0x140   : > { %530 = vmatpush.msra.mxu0 %v525_v47  ;;  %v522_v50 = vld [vmem:[%s1021_s3 + $0x60] sm:$0xff]  ;;  %v521_v51 = vld [vmem:[%s1021_s3 + $0x58] sm:$0xff]  ;;  %v520_v52 = vld [vmem:[%s1021_s3 + $0x50] sm:$0xff] }
 0x141   : > { %v519_v53 = vld [vmem:[%s1021_s3 + $0x48] sm:$0xff]  ;;  %v518_v54 = vld [vmem:[%s1021_s3 + $0x40] sm:$0xff]  ;;  %v517_v55 = vld [vmem:[%s1021_s3 + $0x38] sm:$0xff] }
 0x142   : > { %531 = vmatpush.msra.mxu0 %v524_v48  ;;  %v516_v56 = vld [vmem:[%s1021_s3 + $0x30] sm:$0xff]  ;;  %v515_v57 = vld [vmem:[%s1021_s3 + $0x28] sm:$0xff]  ;;  %v514_v58 = vld [vmem:[%s1021_s3 + $0x20] sm:$0xff] }
 0x143   : > { %v513_v59 = vld [vmem:[%s1021_s3 + $0x18] sm:$0xff]  ;;  %v512_v60 = vld [vmem:[%s1021_s3 + $0x10] sm:$0xff]  ;;  %v511_v61 = vld [vmem:[%s1021_s3 + $0x8] sm:$0xff] }
 0x144   : > { %532 = vmatpush.msra.mxu0 %v523_v49  ;;  %v510_v62 = vld [vmem:[%s1021_s3] sm:$0xff] }
 0x145   : > { %v509_v63 = vld [vmem:[#allocation2] sm:$0xff] }
 0x146   : > { %533 = vmatpush.msra.mxu0 %v522_v50  ;;  %v779_v0 = vld [vmem:[%s1022_s4] ss:$0 sm:$0xff] }
 0x148   : > { %534 = vmatpush.msra.mxu0 %v521_v51 }
 0x14a   : > { %535 = vmatpush.msra.mxu0 %v520_v52 }
 0x14c   : > { %536 = vmatpush.msra.mxu0 %v519_v53 }
 0x14e   : > { %537 = vmatpush.msra.mxu0 %v518_v54 }
 0x150   : > { %538 = vmatpush.msra.mxu0 %v517_v55 }
 0x152   : > { %539 = vmatpush.msra.mxu0 %v516_v56 }
 0x154   : > { %540 = vmatpush.msra.mxu0 %v515_v57 }
 0x156   : > { %541 = vmatpush.msra.mxu0 %v514_v58 }
 0x158   : > { %542 = vmatpush.msra.mxu0 %v513_v59 }
 0x15a   : > { %543 = vmatpush.msra.mxu0 %v512_v60 }
 0x15c   : > { %544 = vmatpush.msra.mxu0 %v511_v61 }
 0x15e   : > { %545 = vmatpush.msra.mxu0 %v510_v62 }
 0x15f   : > { %546 = vmatmul.f32.vlgmr.msra.gmra.mxu0 %v509_v63 }
 0x1dc   : > { %v547_v1 = vpop.f32.mrf.mxu0 }
 0x1dd   : > { %v548_v2 = vadd.f32 %v779_v0, %v547_v1 }
 0x1df   : > { %550 = vst [vmem:[#allocation6] sm:$0xff] %v548_v2 }
 0x1e0 PF: > { %p742_p10 = scmp.eq.s32.totalorder %s633_s21, 1  ;;  %s561_s6 = sshll.u32 %s1023_s5, 4  ;;  %s562_s6 = int_to_ptr.hbm [resolvable:$true] %s561_s6 }
 0x1e1   : > { %s876_s7 = smov [#allocation6]  }
 0x1e2   : > { %s559_s8 = sshll.u32 %s876_s7, 4  ;;  %s560_s8 = int_to_ptr.vmem [resolvable:$true] %s559_s8 }
 0x1e3   : > { %733 = dma.vmem_to_hbm [thread:$0]  (%p742_p10), %s560_s8, 128, %s562_s6, [#allocation5]  }
 0x1e4   : > { %855 = dma.done.wait (%p742_p10), [#allocation5], 128  }
 0x1e5   : > { %857 = vsyncadd (%p742_p10), [#allocation5], 4294967168 }
 0x1e6 PF: > { %s17_s20 = sadd.s32 1, %s868_s20   ;;  %s1024_s18 = smov %s864_s19 }
 0x1e7   : > { %p14_p11 = scmp.ge.s32.totalorder %s17_s20, 4   ;;  %s1025_s19 = smov %s1027_s22 }
 0x1e9   :  { %16 = sbr.rel (!%p14_p11) target bundleno = 3 (0x3), region = 81 }
 0x1ee   :  { %575 = vsyncpa [#allocation4], 1 }
 0x1ef   :  { %577 = vsyncpa [#allocation4 + $0x1], 1 }
 0x1f0   :  { %578 = vsyncpa [#allocation5], 1 }
 0x1f1   :  { %580 = vsyncpa [#allocation5 + $0x1], 1 }

</bundles_post_ra>
